<compile_context>
chip_gen: v5e
topology: v5e:2x2
jax: 0.10.0
libtpu: 0.0.40
codegen_flags: <defaults>
</compile_context>

<pallas_src>
import jax
import jax.numpy as jnp
from jax.experimental import pallas as pl
from jax.experimental.pallas import tpu as pltpu


# Rows per grid step (tunable). At 8192 the live footprint is ~10-16 MiB of
# f32/bf16 intermediates + double-buffered x/out, well under the 48 MiB limit
# we request below.
_TILE_B = 8192
_MIN_TILE_B = 512
_VMEM_LIMIT_BYTES = 48 * 1024 * 1024


def _round_up(n, m):
    return ((n + m - 1) // m) * m


def _choose_tile_b(batch, max_tile=_TILE_B, min_tile=_MIN_TILE_B):
    """Pick a batch tile: big (amortize step overhead + MXU weight reloads),
    multiple of 8 sublanes when tiling, and >= 2 grid steps for v7x's 2 TCs
    whenever the batch is large enough to split."""
    if batch <= max(min_tile, 8):
        return batch  # single step; block == full array, any size is legal
    tile = min(max_tile, batch)
    tile = (tile // 8) * 8
    # Guarantee at least 2 grid steps so the "parallel" axis feeds both
    # TensorCores on v7x (no effect on correctness for v5e/v6e).
    while pl.cdiv(batch, tile) < 2 and tile >= 2 * min_tile:
        tile = ((tile // 2) // 8) * 8
    return max(tile, 8)


def _mlp_whitebox_kernel(x_ref, wa_ref, wb_ref, bb_ref,
                         w5_ref, b5_ref, w6_ref, b6_ref, out_ref):
    f32 = jnp.float32
    cdt = wa_ref.dtype  # bf16 compute dtype for matmul operands

    # fc1 || fc2 (block-diagonal, bias folded into Wa via the ones column):
    # (tile_b, k_pad) @ (k_pad, 128) -> [h1_pre | h2_pre]
    h = jnp.dot(x_ref[...], wa_ref[...], preferred_element_type=f32)
    h = jnp.maximum(h, 0.0).astype(cdt)

    # fc3 || fc4 (block-diagonal): (tile_b, 128) @ (128, 64) -> [h1 | h2] == concat
    h = jnp.dot(h, wb_ref[...], preferred_element_type=f32) + bb_ref[...]
    h = jnp.maximum(h, 0.0).astype(cdt)

    # fc5 on the (implicit) concat: (tile_b, 64) @ (64, 32)
    h = jnp.dot(h, w5_ref[...], preferred_element_type=f32) + b5_ref[...]
    h = jnp.maximum(h, 0.0).astype(cdt)

    # fc6: (tile_b, 32) @ (32, 2)
    y = jnp.dot(h, w6_ref[...], preferred_element_type=f32) + b6_ref[...]
    out_ref[...] = jnp.maximum(y, 0.0)


def mlp_whitebox_forward(x1, x2, params):
    """x1: (..., dim_in_1), x2: (..., dim_in_2). Returns (batch, 2) float32."""
    d1 = params["w1"].shape[0]
    d2 = params["w2"].shape[0]
    x1 = x1.reshape(-1, d1)
    x2 = x2.reshape(-1, d2)
    batch = x1.shape[0]
    assert x2.shape[0] == batch, "x1 and x2 must have the same flattened batch"

    f32, bf16 = jnp.float32, jnp.bfloat16

    # ---- wrapper-side weight fusion (pure glue) ---------------------------
    k_raw = d1 + d2
    # +1 column: carries 1.0 so concat(b1, b2) rides in Wa's row k_raw (free bias).
    k_pad = _round_up(k_raw + 1, 8)

    wa = jnp.zeros((k_pad, 128), f32)
    wa = wa.at[:d1, :64].set(params["w1"])
    wa = wa.at[d1:k_raw, 64:].set(params["w2"])
    wa = wa.at[k_raw, :].set(jnp.concatenate([params["b1"], params["b2"]]))

    wb = jnp.zeros((128, 64), f32)
    wb = wb.at[:64, :32].set(params["w3"])
    wb = wb.at[64:, 32:].set(params["w4"])
    bb = jnp.concatenate([params["b3"], params["b4"]]).reshape(1, 64)

    w5 = params["w5"]
    b5 = params["b5"].reshape(1, 32)
    w6 = params["w6"]
    b6 = params["b6"].reshape(1, 2)

    # Fused input assembled in ONE pass: [x1 | x2 | 1.0 | 0-pad] -> bf16.
    parts = [x1, x2, jnp.ones((batch, 1), f32)]
    extra = k_pad - (k_raw + 1)
    if extra > 0:
        parts.append(jnp.zeros((batch, extra), f32))
    x = jnp.concatenate(parts, axis=1).astype(bf16)

    # bf16 matmul operands, f32 biases.
    wa, wb, w5, w6 = (w.astype(bf16) for w in (wa, wb, w5, w6))
    bb, b5, b6 = (b.astype(f32) for b in (bb, b5, b6))

    # ---- grid / BlockSpecs ------------------------------------------------
    tile_b = _choose_tile_b(batch)
    grid = (pl.cdiv(batch, tile_b),)

    def _const2d(arr):
        # small weight/bias: whole array, constant block index -> VMEM-resident
        return pl.BlockSpec(arr.shape, lambda i: (0, 0))

    in_specs = [
        pl.BlockSpec((tile_b, k_pad), lambda i: (i, 0)),   # x: batch-tiled
        _const2d(wa),
        _const2d(wb), _const2d(bb),
        _const2d(w5), _const2d(b5),
        _const2d(w6), _const2d(b6),
    ]

    flops = 2 * batch * (k_pad * 128 + 128 * 64 + 64 * 32 + 32 * 2)
    weight_bytes = 2 * (k_pad * 128 + 128 * 64 + 64 * 32 + 32 * 2) + 4 * (64 + 32 + 2)
    bytes_accessed = batch * (k_pad * 2 + 2 * 4) + weight_bytes

    out = pl.pallas_call(
        _mlp_whitebox_kernel,
        out_shape=jax.ShapeDtypeStruct((batch, 2), jnp.float32),
        grid=grid,
        in_specs=in_specs,
        out_specs=pl.BlockSpec((tile_b, 2), lambda i: (i, 0)),
        compiler_params=pltpu.CompilerParams(
            dimension_semantics=("parallel",),
            vmem_limit_bytes=_VMEM_LIMIT_BYTES),
        cost_estimate=pl.CostEstimate(
            flops=flops, transcendentals=0, bytes_accessed=bytes_accessed),
    )(x, wa, wb, bb, w5, b5, w6, b6)
    return out


def init_params(key, dim_in_1, dim_in_2):
    """Deterministic synthetic init. Weights stored as (in, out) (= PyTorch W.T)."""
    dims = {
        "w1": (dim_in_1, 64), "b1": (64,),
        "w2": (dim_in_2, 64), "b2": (64,),
        "w3": (64, 32), "b3": (32,),
        "w4": (64, 32), "b4": (32,),
        "w5": (64, 32), "b5": (32,),
        "w6": (32, 2), "b6": (2,),
    }
    params = {}
    keys = jax.random.split(key, len(dims))
    for k, (name, shape) in zip(keys, dims.items()):
        fan_in = shape[0] if len(shape) == 2 else 1
        scale = 1.0 / jnp.sqrt(jnp.float32(fan_in))
        params[name] = jax.random.uniform(k, shape, jnp.float32, -1.0, 1.0) * scale
    return params


def _reference(x1, x2, params):
    """Pure-JAX f32 reference mirroring the PyTorch forward."""
    relu = lambda v: jnp.maximum(v, 0.0)
    d1 = params["w1"].shape[0]
    d2 = params["w2"].shape[0]
    x1 = x1.reshape(-1, d1)
    x2 = x2.reshape(-1, d2)
    h1 = relu(relu(x1 @ params["w1"] + params["b1"]) @ params["w3"] + params["b3"])
    h2 = relu(relu(x2 @ params["w2"] + params["b2"]) @ params["w4"] + params["b4"])
    h = jnp.concatenate([h1, h2], axis=1)
    h = relu(h @ params["w5"] + params["b5"])
    return relu(h @ params["w6"] + params["b6"])


if __name__ == "__main__":
    key = jax.random.PRNGKey(0)
    dim_in_1, dim_in_2 = 10, 16
    batch = 8

    k_p, k_x1, k_x2 = jax.random.split(key, 3)
    params = init_params(k_p, dim_in_1, dim_in_2)
    x1 = jax.random.normal(k_x1, (batch, dim_in_1), jnp.float32)
    x2 = jax.random.normal(k_x2, (batch, dim_in_2), jnp.float32)

    out = jax.block_until_ready(mlp_whitebox_forward(x1, x2, params))
    ref = _reference(x1, x2, params)
    assert out.shape == (batch, 2)
    # bf16 matmul operands -> loosened tolerance vs f32 reference
    assert jnp.allclose(out, ref, atol=5e-2, rtol=5e-2), \
        float(jnp.max(jnp.abs(out - ref)))

    # Second check at a larger batch to exercise a multi-step grid
    # (tile-chooser splits 4096 rows into >= 2 steps for v7x's dual TCs).
    kb1, kb2 = jax.random.split(jax.random.PRNGKey(1))
    big = 4096
    xb1 = jax.random.normal(kb1, (big, dim_in_1), jnp.float32)
    xb2 = jax.random.normal(kb2, (big, dim_in_2), jnp.float32)
    outb = jax.block_until_ready(mlp_whitebox_forward(xb1, xb2, params))
    refb = _reference(xb1, xb2, params)
    assert outb.shape == (big, 2)
    assert jnp.allclose(outb, refb, atol=5e-2, rtol=5e-2), \
        float(jnp.max(jnp.abs(outb - refb)))

    print("KERNEL_OK")
</pallas_src>

<mosaic_0001>
module attributes {stable_mosaic.version = 11 : i64} {
  func.func @_mlp_whitebox_kernel(%arg0: i32, %arg1: memref<8x32xbf16, #tpu.memory_space<vmem>>, %arg2: memref<32x128xbf16, #tpu.memory_space<vmem>>, %arg3: memref<128x64xbf16, #tpu.memory_space<vmem>>, %arg4: memref<1x64xf32, #tpu.memory_space<vmem>>, %arg5: memref<64x32xbf16, #tpu.memory_space<vmem>>, %arg6: memref<1x32xf32, #tpu.memory_space<vmem>>, %arg7: memref<32x2xbf16, #tpu.memory_space<vmem>>, %arg8: memref<1x2xf32, #tpu.memory_space<vmem>>, %arg9: memref<8x2xf32, #tpu.memory_space<vmem>>) attributes {dimension_semantics = [#tpu.dimension_semantics<parallel>], iteration_bounds = array<i64: 1>, scalar_prefetch = 0 : i64, scratch_operands = 0 : i64, tpu.core_type = #tpu.core_type<tc>, window_params = [{transform_indices = @transform_0, window_bounds = array<i64: 8, 32>}, {pipeline_mode = #tpu.pipeline_mode<synchronous>, transform_indices = @transform_1, window_bounds = array<i64: 32, 128>}, {pipeline_mode = #tpu.pipeline_mode<synchronous>, transform_indices = @transform_2, window_bounds = array<i64: 128, 64>}, {pipeline_mode = #tpu.pipeline_mode<synchronous>, transform_indices = @transform_3, window_bounds = array<i64: 1, 64>}, {pipeline_mode = #tpu.pipeline_mode<synchronous>, transform_indices = @transform_4, window_bounds = array<i64: 64, 32>}, {pipeline_mode = #tpu.pipeline_mode<synchronous>, transform_indices = @transform_5, window_bounds = array<i64: 1, 32>}, {pipeline_mode = #tpu.pipeline_mode<synchronous>, transform_indices = @transform_6, window_bounds = array<i64: 32, 2>}, {pipeline_mode = #tpu.pipeline_mode<synchronous>, transform_indices = @transform_7, window_bounds = array<i64: 1, 2>}, {transform_indices = @transform_8, window_bounds = array<i64: 8, 2>}]} {
    %c0 = arith.constant 0 : index
    %c0_0 = arith.constant 0 : index
    %0 = vector.load %arg1[%c0, %c0_0] : memref<8x32xbf16, #tpu.memory_space<vmem>>, vector<8x32xbf16>
    %c0_1 = arith.constant 0 : index
    %c0_2 = arith.constant 0 : index
    %1 = vector.load %arg2[%c0_1, %c0_2] : memref<32x128xbf16, #tpu.memory_space<vmem>>, vector<32x128xbf16>
    %cst = arith.constant dense<0.000000e+00> : vector<8x128xf32>
    %2 = tpu.matmul %0, %1, %cst {dimension_numbers = #tpu.dot_dimension_numbers<[1], [0], [0], [1], [0, 0, 1, 1], [], []>} : vector<8x32xbf16>, vector<32x128xbf16>, vector<8x128xf32> -> vector<8x128xf32>
    %cst_3 = arith.constant 0.000000e+00 : f32
    %3 = vector.broadcast %cst_3 : f32 to vector<8x128xf32>
    %4 = arith.maximumf %2, %3 : vector<8x128xf32>
    %5 = arith.truncf %4 : vector<8x128xf32> to vector<8x128xbf16>
    %c0_4 = arith.constant 0 : index
    %c0_5 = arith.constant 0 : index
    %6 = vector.load %arg3[%c0_4, %c0_5] : memref<128x64xbf16, #tpu.memory_space<vmem>>, vector<128x64xbf16>
    %cst_6 = arith.constant dense<0.000000e+00> : vector<8x64xf32>
    %7 = tpu.matmul %5, %6, %cst_6 {dimension_numbers = #tpu.dot_dimension_numbers<[1], [0], [0], [1], [0, 0, 1, 1], [], []>} : vector<8x128xbf16>, vector<128x64xbf16>, vector<8x64xf32> -> vector<8x64xf32>
    %c0_7 = arith.constant 0 : index
    %c0_8 = arith.constant 0 : index
    %8 = vector.load %arg4[%c0_7, %c0_8] : memref<1x64xf32, #tpu.memory_space<vmem>>, vector<1x64xf32>
    %9 = vector.broadcast %8 : vector<1x64xf32> to vector<8x64xf32>
    %10 = arith.addf %7, %9 : vector<8x64xf32>
    %cst_9 = arith.constant 0.000000e+00 : f32
    %11 = vector.broadcast %cst_9 : f32 to vector<8x64xf32>
    %12 = arith.maximumf %10, %11 : vector<8x64xf32>
    %13 = arith.truncf %12 : vector<8x64xf32> to vector<8x64xbf16>
    %c0_10 = arith.constant 0 : index
    %c0_11 = arith.constant 0 : index
    %14 = vector.load %arg5[%c0_10, %c0_11] : memref<64x32xbf16, #tpu.memory_space<vmem>>, vector<64x32xbf16>
    %cst_12 = arith.constant dense<0.000000e+00> : vector<8x32xf32>
    %15 = tpu.matmul %13, %14, %cst_12 {dimension_numbers = #tpu.dot_dimension_numbers<[1], [0], [0], [1], [0, 0, 1, 1], [], []>} : vector<8x64xbf16>, vector<64x32xbf16>, vector<8x32xf32> -> vector<8x32xf32>
    %c0_13 = arith.constant 0 : index
    %c0_14 = arith.constant 0 : index
    %16 = vector.load %arg6[%c0_13, %c0_14] : memref<1x32xf32, #tpu.memory_space<vmem>>, vector<1x32xf32>
    %17 = vector.broadcast %16 : vector<1x32xf32> to vector<8x32xf32>
    %18 = arith.addf %15, %17 : vector<8x32xf32>
    %cst_15 = arith.constant 0.000000e+00 : f32
    %19 = vector.broadcast %cst_15 : f32 to vector<8x32xf32>
    %20 = arith.maximumf %18, %19 : vector<8x32xf32>
    %21 = arith.truncf %20 : vector<8x32xf32> to vector<8x32xbf16>
    %c0_16 = arith.constant 0 : index
    %c0_17 = arith.constant 0 : index
    %22 = vector.load %arg7[%c0_16, %c0_17] : memref<32x2xbf16, #tpu.memory_space<vmem>>, vector<32x2xbf16>
    %cst_18 = arith.constant dense<0.000000e+00> : vector<8x2xf32>
    %23 = tpu.matmul %21, %22, %cst_18 {dimension_numbers = #tpu.dot_dimension_numbers<[1], [0], [0], [1], [0, 0, 1, 1], [], []>} : vector<8x32xbf16>, vector<32x2xbf16>, vector<8x2xf32> -> vector<8x2xf32>
    %c0_19 = arith.constant 0 : index
    %c0_20 = arith.constant 0 : index
    %24 = vector.load %arg8[%c0_19, %c0_20] : memref<1x2xf32, #tpu.memory_space<vmem>>, vector<1x2xf32>
    %25 = vector.broadcast %24 : vector<1x2xf32> to vector<8x2xf32>
    %26 = arith.addf %23, %25 : vector<8x2xf32>
    %cst_21 = arith.constant 0.000000e+00 : f32
    %27 = vector.broadcast %cst_21 : f32 to vector<8x2xf32>
    %28 = arith.maximumf %26, %27 : vector<8x2xf32>
    %c0_22 = arith.constant 0 : index
    %c0_23 = arith.constant 0 : index
    %29 = vector.load %arg9[%c0_22, %c0_23] : memref<8x2xf32, #tpu.memory_space<vmem>>, vector<8x2xf32>
    tpu.vector_store %arg9[%c0_22, %c0_23], %28 {strides = array<i32>} : memref<8x2xf32, #tpu.memory_space<vmem>>, vector<8x2xf32>,
    return
  }
  func.func @transform_0(%arg0: i32) -> (i32, i32) {
    %c0_i32 = arith.constant 0 : i32
    %c0_i32_0 = arith.constant 0 : i32
    return %arg0, %c0_i32 : i32, i32
  }
  func.func @transform_1(%arg0: i32) -> (i32, i32) {
    %c0_i32 = arith.constant 0 : i32
    %c0_i32_0 = arith.constant 0 : i32
    %c0_i32_1 = arith.constant 0 : i32
    return %c0_i32, %c0_i32_0 : i32, i32
  }
  func.func @transform_2(%arg0: i32) -> (i32, i32) {
    %c0_i32 = arith.constant 0 : i32
    %c0_i32_0 = arith.constant 0 : i32
    %c0_i32_1 = arith.constant 0 : i32
    return %c0_i32, %c0_i32_0 : i32, i32
  }
  func.func @transform_3(%arg0: i32) -> (i32, i32) {
    %c0_i32 = arith.constant 0 : i32
    %c0_i32_0 = arith.constant 0 : i32
    %c0_i32_1 = arith.constant 0 : i32
    return %c0_i32, %c0_i32_0 : i32, i32
  }
  func.func @transform_4(%arg0: i32) -> (i32, i32) {
    %c0_i32 = arith.constant 0 : i32
    %c0_i32_0 = arith.constant 0 : i32
    %c0_i32_1 = arith.constant 0 : i32
    return %c0_i32, %c0_i32_0 : i32, i32
  }
  func.func @transform_5(%arg0: i32) -> (i32, i32) {
    %c0_i32 = arith.constant 0 : i32
    %c0_i32_0 = arith.constant 0 : i32
    %c0_i32_1 = arith.constant 0 : i32
    return %c0_i32, %c0_i32_0 : i32, i32
  }
  func.func @transform_6(%arg0: i32) -> (i32, i32) {
    %c0_i32 = arith.constant 0 : i32
    %c0_i32_0 = arith.constant 0 : i32
    %c0_i32_1 = arith.constant 0 : i32
    return %c0_i32, %c0_i32_0 : i32, i32
  }
  func.func @transform_7(%arg0: i32) -> (i32, i32) {
    %c0_i32 = arith.constant 0 : i32
    %c0_i32_0 = arith.constant 0 : i32
    %c0_i32_1 = arith.constant 0 : i32
    return %c0_i32, %c0_i32_0 : i32, i32
  }
  func.func @transform_8(%arg0: i32) -> (i32, i32) {
    %c0_i32 = arith.constant 0 : i32
    %c0_i32_0 = arith.constant 0 : i32
    return %arg0, %c0_i32 : i32, i32
  }
}

</mosaic_0001>

<bundles_post_ra>
// kernel: tpu_custom_call.1
= control target key start
LH: loop header
LB: loop body
LE: loop exit
PB: predicated region body
PF: predicated region fallthrough
CT: control target
= control target key end

     0   :  { %vm47_vm0 = vcmask 261120   ;;  %vm185_vm1 = vcmask 523264   ;;  %vm241_vm2 = vcmask 15360   ;;  %s443_s1 = inlined_call_operand.vmem [shape: bf16[32,128], index: 1, kind: input, shape index: {}]   ;;  %s444_s2 = inlined_call_operand.vmem [shape: bf16[128,64], index: 2, kind: input, shape index: {}]   ;;  %s445_s0 = inlined_call_operand.vmem [shape: bf16[8,32], index: 0, kind: input, shape index: {}]   ;;  %s446_s3 = inlined_call_operand.vmem [shape: f32[1,64], index: 3, kind: input, shape index: {}]   ;;  %s447_s4 = inlined_call_operand.vmem [shape: bf16[64,32], index: 4, kind: input, shape index: {}]   ;;  %s448_s5 = inlined_call_operand.vmem [shape: f32[1,32], index: 5, kind: input, shape index: {}]   ;;  %s449_s7 = inlined_call_operand.vmem [shape: f32[1,2], index: 7, kind: input, shape index: {}]   ;;  %s450_s6 = inlined_call_operand.vmem [shape: bf16[32,2], index: 6, kind: input, shape index: {}]   ;;  %s451_s8 = inlined_call_operand.vmem [shape: f32[8,2], index: 8, kind: output, shape index: {}]  }
   0x1   :  { %v315_v0 = vld [vmem:[%s443_s1 + $0x8] sm:$0xff]  ;;  %v323_v1 = vld [vmem:[%s444_s2 + $0x38] sm:$0xff]  ;;  %v314_v2 = vld [vmem:[%s443_s1] sm:$0xff] }
   0x2   :  { %57 = vmatpush.bf16.msra.mxu0 %v315_v0  ;;  %134 = vmatpush.bf16.msra.mxu1 %v323_v1  ;;  %v322_v3 = vld [vmem:[%s444_s2 + $0x30] sm:$0xff]  ;;  %v30_v4 = vld [vmem:[%s445_s0] sm:$0xf]  ;;  %v321_v5 = vld [vmem:[%s444_s2 + $0x28] sm:$0xff] }
   0x3   :  { %v320_v6 = vld [vmem:[%s444_s2 + $0x20] sm:$0xff]  ;;  %v319_v7 = vld [vmem:[%s444_s2 + $0x18] sm:$0xff]  ;;  %v318_v8 = vld [vmem:[%s444_s2 + $0x10] sm:$0xff] }
   0x4   :  { %v317_v9 = vld [vmem:[%s444_s2 + $0x8] sm:$0xff]  ;;  %v316_v10 = vld [vmem:[%s444_s2] sm:$0xff]  ;;  %v327_v11 = vld [vmem:[%s447_s4 + $0x18] sm:$0xff] }
   0x5   :  { %193 = vmatpush.bf16.msra.mxu2 %v327_v11  ;;  %v326_v12 = vld [vmem:[%s447_s4 + $0x10] sm:$0xff]  ;;  %v325_v17 = vld [vmem:[%s447_s4 + $0x8] sm:$0xff]  ;;  %v324_v18 = vld [vmem:[%s447_s4] sm:$0xff] }
   0x6   :  { %58 = vmatpush.bf16.msra.mxu0 %v314_v2  ;;  %135 = vmatpush.bf16.msra.mxu1 %v322_v3  ;;  %v330_v19 = vld [vmem:[%s446_s3] ss:$0 sm:$0xff]  ;;  %v329_v25 = vld [vmem:[%s450_s6 + $0x8] sm:$0xff] }
   0x7   :  { %233 = vmatpush.bf16.msra.mxu3 %v329_v25  ;;  %v328_v26 = vld [vmem:[%s450_s6] sm:$0xff] }
   0x8   :  { %v331_v27 = vld [vmem:[%s448_s5] ss:$0 sm:$0xff] }
   0x9   :  { %255 = vmatmul.msk.bf16.vlgmr.msra.gmra.mxu0 %vm47_vm0, %v30_v4  ;;  %194 = vmatpush.bf16.msra.mxu2 %v326_v12  ;;  %v332_v33 = vld [vmem:[%s449_s7] ss:$0 sm:$0xff] }
   0xa   :  { %136 = vmatpush.bf16.msra.mxu1 %v321_v5 }
   0xb   :  { %234 = vmatpush.bf16.msra.mxu3 %v328_v26 }
   0xd   :  { %195 = vmatpush.bf16.msra.mxu2 %v325_v17 }
   0xe   :  { %137 = vmatpush.bf16.msra.mxu1 %v320_v6 }
  0x11   :  { %196 = vmatpush.bf16.msra.mxu2 %v324_v18 }
  0x12   :  { %138 = vmatpush.bf16.msra.mxu1 %v319_v7 }
  0x16   :  { %139 = vmatpush.bf16.msra.mxu1 %v318_v8 }
  0x1a   :  { %140 = vmatpush.bf16.msra.mxu1 %v317_v9 }
  0x1e   :  { %141 = vmatpush.bf16.msra.mxu1 %v316_v10 }
  0x86   :  { %v60_v13 = vpop.f32.mrf.mxu0 }
  0x87   :  { %v64_v14 = vmax.f32 %v60_v13, 0.0 }
  0x89   :  { %v65_v15 = vpack.c.bf16 %v64_v14, %v64_v14 }
  0x8b   :  { %142 = vmatmul.bf16.vlgmr.msra.gmra.mxu1 %v65_v15 }
  0x8e   :  { %v62_v16 = vpop.f32.mrf.mxu0 }
 0x108   :  { %v143_v20 = vpop.f32.mrf.mxu1 }
 0x109   :  { %v144_v21 = vadd.f32 %v330_v19, %v143_v20 }
 0x10b   :  { %v147_v22 = vmax.f32 %v144_v21, 0.0 }
 0x10d   :  { %v148_v23 = vpack.c.bf16 %v147_v22, %v147_v22 }
 0x10f   :  { %304 = vmatmul.msk.bf16.vlgmr.msra.gmra.mxu2 %vm185_vm1, %v148_v23 }
 0x110   :  { %v145_v24 = vpop.f32.mrf.mxu1 }
 0x192   :  { %v198_v28 = vpop.f32.mrf.mxu2 }
 0x193   :  { %v199_v29 = vadd.f32 %v331_v27, %v198_v28 }
 0x195   :  { %v202_v30 = vmax.f32 %v199_v29, 0.0 }
 0x197   :  { %v203_v31 = vpack.c.bf16 %v202_v30, %v202_v30 }
 0x199   :  { %313 = vmatmul.msk.bf16.vlgmr.msra.gmra.mxu3 %vm47_vm0, %v203_v31 }
 0x19a   :  { %v200_v32 = vpop.f32.mrf.mxu2 }
 0x21c   :  { %v236_v34 = vpop.f32.mrf.mxu3 }
 0x21d   :  { %v237_v35 = vadd.f32 %v332_v33, %v236_v34 }
 0x21f   :  { %v240_v36 = vmax.f32 %v237_v35, 0.0 }
 0x221   :  { %242 = vst.msk [vmem:[%s451_s8] sm:$0xff] %vm241_vm2, %v240_v36 }
 0x224   :  { %v238_v37 = vpop.f32.mrf.mxu3 }

</bundles_post_ra>
